<compile_context>
chip_gen: v5e
topology: v5e:2x2
jax: 0.10.0
libtpu: 0.0.40
codegen_flags: <defaults>
</compile_context>

<pallas_src>
import jax
import jax.numpy as jnp
from jax.experimental import pallas as pl
from jax.experimental.pallas import tpu as pltpu

_BN_EPS = 1e-5
_LEAKY_SLOPE = 0.2
_LANE = 128  # TPU lane width; pad feature dims / output N to multiples of this.


# --------------------------------------------------------------------------
# Kernel
# --------------------------------------------------------------------------
def _disc_kernel(x_ref,
                 w1_ref, g1_ref, be1_ref,
                 w2_ref, g2_ref, be2_ref,
                 w3_ref, b3_ref,
                 out_ref):
    """Whole 3-layer discriminator on one grid point (everything in VMEM)."""

    def bn_lrelu(h, gamma, beta):
        # Training-mode BatchNorm1d (batch mean, biased variance) folded into a
        # single per-feature scale, then LeakyReLU(0.2) as one maximum.
        mean = jnp.mean(h, axis=0, keepdims=True)          # [1, H]
        d = h - mean                                        # [B, H]
        var = jnp.mean(d * d, axis=0, keepdims=True)        # [1, H]
        scale = gamma * jax.lax.rsqrt(var + _BN_EPS)        # [1, H] (EUP rsqrt)
        y = d * scale + beta                                 # one mul + one add / elem
        return jnp.maximum(y, _LEAKY_SLOPE * y)              # LeakyReLU(0.2)

    # ---- Linear 1 (bf16 MXU, f32 accumulate; bias dropped: cancelled by BN) ----
    h = jnp.dot(x_ref[...], w1_ref[...], preferred_element_type=jnp.float32)
    h = bn_lrelu(h, g1_ref[...], be1_ref[...])

    # ---- Linear 2 ----
    w2 = w2_ref[...]
    h = jnp.dot(h.astype(w2.dtype), w2, preferred_element_type=jnp.float32)
    h = bn_lrelu(h, g2_ref[...], be2_ref[...])

    # ---- Linear 3: N padded to 128 -> lane-dense [B, 128] store ----
    w3 = w3_ref[...]
    out = jnp.dot(h.astype(w3.dtype), w3, preferred_element_type=jnp.float32)
    out = out + b3_ref[...]
    out_ref[...] = out


# --------------------------------------------------------------------------
# Wrapper
# --------------------------------------------------------------------------
def _round_up(n, m):
    return ((n + m - 1) // m) * m


def _pad_to(a, target_shape, value=0.0):
    pads = [(0, t - s) for s, t in zip(a.shape, target_shape)]
    return jnp.pad(a, pads, constant_values=value)


def _full_block_spec(arr):
    # Fixed late-binding bug: capture ndim via a default argument.
    ndim = arr.ndim
    return pl.BlockSpec(arr.shape, lambda *_ignored, _n=ndim: (0,) * _n)


def gan_discriminator_forward(x, params, *, matmul_dtype=jnp.bfloat16):
    """x: [B, input_dim] float32.  Returns logits [B, 1] float32."""
    B, D = x.shape
    H = params["w1"].shape[1]

    Dp = _round_up(D, _LANE)     # padded input features
    Hp = _round_up(H, _LANE)     # padded hidden features
    NOUT = _LANE                 # padded final-linear output width (lane-dense)

    # Zero-padding is exact: padded features are 0 through every layer
    # (zero weight rows/cols, gamma pad=1, beta pad=0, b3 pad=0).
    x_p = _pad_to(x, (B, Dp)).astype(matmul_dtype)
    w1 = _pad_to(params["w1"], (Dp, Hp)).astype(matmul_dtype)
    g1 = _pad_to(params["gamma1"], (Hp,), 1.0).reshape(1, Hp).astype(jnp.float32)
    be1 = _pad_to(params["beta1"], (Hp,), 0.0).reshape(1, Hp).astype(jnp.float32)
    w2 = _pad_to(params["w2"], (Hp, Hp)).astype(matmul_dtype)
    g2 = _pad_to(params["gamma2"], (Hp,), 1.0).reshape(1, Hp).astype(jnp.float32)
    be2 = _pad_to(params["beta2"], (Hp,), 0.0).reshape(1, Hp).astype(jnp.float32)
    w3 = _pad_to(params["w3"], (Hp, NOUT)).astype(matmul_dtype)
    b3 = _pad_to(params["b3"], (NOUT,), 0.0).reshape(1, NOUT).astype(jnp.float32)
    # NOTE: b1 / b2 are intentionally not passed — exactly cancelled by BN.

    args = (x_p, w1, g1, be1, w2, g2, be2, w3, b3)
    in_specs = [_full_block_spec(a) for a in args]
    out_spec = pl.BlockSpec((B, NOUT), lambda: (0, 0))

    out = pl.pallas_call(
        _disc_kernel,
        grid=(),
        in_specs=in_specs,
        out_specs=out_spec,
        out_shape=jax.ShapeDtypeStruct((B, NOUT), jnp.float32),
    )(*args)

    # Slice the real logit column back out (padded columns are exactly b3-pad=0).
    return out[:, :1]


# --------------------------------------------------------------------------
# Params + reference
# --------------------------------------------------------------------------
def init_params(key, input_dim, hidden_dim):
    """Deterministic synthetic parameter init matching the module's shapes."""
    ks = jax.random.split(key, 6)
    # Linear weights stored as [in, out]; biases as [out].
    w1 = jax.random.normal(ks[0], (input_dim, hidden_dim), jnp.float32) * 0.1
    b1 = jax.random.normal(ks[1], (hidden_dim,), jnp.float32) * 0.1
    w2 = jax.random.normal(ks[2], (hidden_dim, hidden_dim), jnp.float32) * 0.1
    b2 = jax.random.normal(ks[3], (hidden_dim,), jnp.float32) * 0.1
    w3 = jax.random.normal(ks[4], (hidden_dim, 1), jnp.float32) * 0.1
    b3 = jax.random.normal(ks[5], (1,), jnp.float32) * 0.1
    return {
        "w1": w1, "b1": b1,
        "gamma1": jnp.ones((hidden_dim,), jnp.float32),
        "beta1": jnp.zeros((hidden_dim,), jnp.float32),
        "w2": w2, "b2": b2,
        "gamma2": jnp.ones((hidden_dim,), jnp.float32),
        "beta2": jnp.zeros((hidden_dim,), jnp.float32),
        "w3": w3, "b3": b3,
    }


def _reference_forward(x, p, matmul_dtype=None):
    """Pure-JAX reference (PyTorch semantics: biases included, standard BN).

    If matmul_dtype is given, dot operands are cast to it (f32 accumulate) to
    match the kernel's MXU precision.
    """
    def dot(a, b):
        if matmul_dtype is not None:
            a = a.astype(matmul_dtype)
            b = b.astype(matmul_dtype)
        return jnp.dot(a, b, preferred_element_type=jnp.float32)

    def bn(h, g, b):
        m = jnp.mean(h, axis=0, keepdims=True)
        v = jnp.mean((h - m) ** 2, axis=0, keepdims=True)
        return (h - m) / jnp.sqrt(v + _BN_EPS) * g + b

    def lrelu(h):
        return jnp.where(h >= 0, h, _LEAKY_SLOPE * h)

    h = dot(x, p["w1"]) + p["b1"]
    h = lrelu(bn(h, p["gamma1"], p["beta1"]))
    h = dot(h, p["w2"]) + p["b2"]
    h = lrelu(bn(h, p["gamma2"], p["beta2"]))
    return dot(h, p["w3"]) + p["b3"]


if __name__ == "__main__":
    batch, input_dim, hidden_dim = 8, 16, 32

    key = jax.random.PRNGKey(0)
    k_x, k_p = jax.random.split(key)
    x = jax.random.normal(k_x, (batch, input_dim), jnp.float32)
    params = init_params(k_p, input_dim, hidden_dim)

    out = gan_discriminator_forward(x, params)
    out = jax.block_until_ready(out)
    assert out.shape == (batch, 1)

    # Check against a reference using the same bf16-matmul / f32-BN numerics.
    ref_matched = _reference_forward(x, params, matmul_dtype=jnp.bfloat16)
    assert jnp.allclose(out, ref_matched, atol=2e-3, rtol=2e-3), \
        "mismatch vs matched-precision reference"

    # Sanity check against the full-f32 PyTorch-semantics reference.
    ref_f32 = _reference_forward(x, params)
    assert jnp.allclose(out, ref_f32, atol=5e-2, rtol=5e-2), \
        "mismatch vs f32 reference"

    print("KERNEL_OK")
</pallas_src>

<mosaic_0001>
module attributes {stable_mosaic.version = 11 : i64} {
  func.func @_disc_kernel(%arg0: memref<8x128xbf16, #tpu.memory_space<vmem>>, %arg1: memref<128x128xbf16, #tpu.memory_space<vmem>>, %arg2: memref<1x128xf32, #tpu.memory_space<vmem>>, %arg3: memref<1x128xf32, #tpu.memory_space<vmem>>, %arg4: memref<128x128xbf16, #tpu.memory_space<vmem>>, %arg5: memref<1x128xf32, #tpu.memory_space<vmem>>, %arg6: memref<1x128xf32, #tpu.memory_space<vmem>>, %arg7: memref<128x128xbf16, #tpu.memory_space<vmem>>, %arg8: memref<1x128xf32, #tpu.memory_space<vmem>>, %arg9: memref<8x128xf32, #tpu.memory_space<vmem>>) attributes {dimension_semantics = [], scalar_prefetch = 0 : i64, scratch_operands = 0 : i64, tpu.core_type = #tpu.core_type<tc>} {
    %c0 = arith.constant 0 : index
    %c0_0 = arith.constant 0 : index
    %0 = vector.load %arg0[%c0, %c0_0] : memref<8x128xbf16, #tpu.memory_space<vmem>>, vector<8x128xbf16>
    %c0_1 = arith.constant 0 : index
    %c0_2 = arith.constant 0 : index
    %1 = vector.load %arg1[%c0_1, %c0_2] : memref<128x128xbf16, #tpu.memory_space<vmem>>, vector<128x128xbf16>
    %cst = arith.constant dense<0.000000e+00> : vector<8x128xf32>
    %2 = tpu.matmul %0, %1, %cst {dimension_numbers = #tpu.dot_dimension_numbers<[1], [0], [0], [1], [0, 0, 1, 1], [], []>} : vector<8x128xbf16>, vector<128x128xbf16>, vector<8x128xf32> -> vector<8x128xf32>
    %c0_3 = arith.constant 0 : index
    %c0_4 = arith.constant 0 : index
    %3 = vector.load %arg2[%c0_3, %c0_4] : memref<1x128xf32, #tpu.memory_space<vmem>>, vector<1x128xf32>
    %c0_5 = arith.constant 0 : index
    %c0_6 = arith.constant 0 : index
    %4 = vector.load %arg3[%c0_5, %c0_6] : memref<1x128xf32, #tpu.memory_space<vmem>>, vector<1x128xf32>
    %cst_7 = arith.constant dense<0.000000e+00> : vector<128xf32>
    %5 = vector.multi_reduction <add>, %2, %cst_7 [0] : vector<8x128xf32> to vector<128xf32>
    %6 = vector.shape_cast %5 : vector<128xf32> to vector<1x128xf32>
    %cst_8 = arith.constant 8.000000e+00 : f32
    %7 = vector.broadcast %cst_8 : f32 to vector<1x128xf32>
    %8 = arith.divf %6, %7 : vector<1x128xf32>
    %9 = vector.broadcast %8 : vector<1x128xf32> to vector<8x128xf32>
    %10 = arith.subf %2, %9 : vector<8x128xf32>
    %11 = arith.mulf %10, %10 : vector<8x128xf32>
    %cst_9 = arith.constant dense<0.000000e+00> : vector<128xf32>
    %12 = vector.multi_reduction <add>, %11, %cst_9 [0] : vector<8x128xf32> to vector<128xf32>
    %13 = vector.shape_cast %12 : vector<128xf32> to vector<1x128xf32>
    %cst_10 = arith.constant 8.000000e+00 : f32
    %14 = vector.broadcast %cst_10 : f32 to vector<1x128xf32>
    %15 = arith.divf %13, %14 : vector<1x128xf32>
    %cst_11 = arith.constant 9.99999974E-6 : f32
    %16 = vector.broadcast %cst_11 : f32 to vector<1x128xf32>
    %17 = arith.addf %15, %16 : vector<1x128xf32>
    %18 = math.rsqrt %17 : vector<1x128xf32>
    %19 = arith.mulf %3, %18 : vector<1x128xf32>
    %20 = vector.broadcast %19 : vector<1x128xf32> to vector<8x128xf32>
    %21 = arith.mulf %10, %20 : vector<8x128xf32>
    %22 = vector.broadcast %4 : vector<1x128xf32> to vector<8x128xf32>
    %23 = arith.addf %21, %22 : vector<8x128xf32>
    %cst_12 = arith.constant 2.000000e-01 : f32
    %24 = vector.broadcast %cst_12 : f32 to vector<8x128xf32>
    %25 = arith.mulf %24, %23 : vector<8x128xf32>
    %26 = arith.maximumf %23, %25 : vector<8x128xf32>
    %c0_13 = arith.constant 0 : index
    %c0_14 = arith.constant 0 : index
    %27 = vector.load %arg4[%c0_13, %c0_14] : memref<128x128xbf16, #tpu.memory_space<vmem>>, vector<128x128xbf16>
    %28 = arith.truncf %26 : vector<8x128xf32> to vector<8x128xbf16>
    %cst_15 = arith.constant dense<0.000000e+00> : vector<8x128xf32>
    %29 = tpu.matmul %28, %27, %cst_15 {dimension_numbers = #tpu.dot_dimension_numbers<[1], [0], [0], [1], [0, 0, 1, 1], [], []>} : vector<8x128xbf16>, vector<128x128xbf16>, vector<8x128xf32> -> vector<8x128xf32>
    %c0_16 = arith.constant 0 : index
    %c0_17 = arith.constant 0 : index
    %30 = vector.load %arg5[%c0_16, %c0_17] : memref<1x128xf32, #tpu.memory_space<vmem>>, vector<1x128xf32>
    %c0_18 = arith.constant 0 : index
    %c0_19 = arith.constant 0 : index
    %31 = vector.load %arg6[%c0_18, %c0_19] : memref<1x128xf32, #tpu.memory_space<vmem>>, vector<1x128xf32>
    %cst_20 = arith.constant dense<0.000000e+00> : vector<128xf32>
    %32 = vector.multi_reduction <add>, %29, %cst_20 [0] : vector<8x128xf32> to vector<128xf32>
    %33 = vector.shape_cast %32 : vector<128xf32> to vector<1x128xf32>
    %cst_21 = arith.constant 8.000000e+00 : f32
    %34 = vector.broadcast %cst_21 : f32 to vector<1x128xf32>
    %35 = arith.divf %33, %34 : vector<1x128xf32>
    %36 = vector.broadcast %35 : vector<1x128xf32> to vector<8x128xf32>
    %37 = arith.subf %29, %36 : vector<8x128xf32>
    %38 = arith.mulf %37, %37 : vector<8x128xf32>
    %cst_22 = arith.constant dense<0.000000e+00> : vector<128xf32>
    %39 = vector.multi_reduction <add>, %38, %cst_22 [0] : vector<8x128xf32> to vector<128xf32>
    %40 = vector.shape_cast %39 : vector<128xf32> to vector<1x128xf32>
    %cst_23 = arith.constant 8.000000e+00 : f32
    %41 = vector.broadcast %cst_23 : f32 to vector<1x128xf32>
    %42 = arith.divf %40, %41 : vector<1x128xf32>
    %cst_24 = arith.constant 9.99999974E-6 : f32
    %43 = vector.broadcast %cst_24 : f32 to vector<1x128xf32>
    %44 = arith.addf %42, %43 : vector<1x128xf32>
    %45 = math.rsqrt %44 : vector<1x128xf32>
    %46 = arith.mulf %30, %45 : vector<1x128xf32>
    %47 = vector.broadcast %46 : vector<1x128xf32> to vector<8x128xf32>
    %48 = arith.mulf %37, %47 : vector<8x128xf32>
    %49 = vector.broadcast %31 : vector<1x128xf32> to vector<8x128xf32>
    %50 = arith.addf %48, %49 : vector<8x128xf32>
    %cst_25 = arith.constant 2.000000e-01 : f32
    %51 = vector.broadcast %cst_25 : f32 to vector<8x128xf32>
    %52 = arith.mulf %51, %50 : vector<8x128xf32>
    %53 = arith.maximumf %50, %52 : vector<8x128xf32>
    %c0_26 = arith.constant 0 : index
    %c0_27 = arith.constant 0 : index
    %54 = vector.load %arg7[%c0_26, %c0_27] : memref<128x128xbf16, #tpu.memory_space<vmem>>, vector<128x128xbf16>
    %55 = arith.truncf %53 : vector<8x128xf32> to vector<8x128xbf16>
    %cst_28 = arith.constant dense<0.000000e+00> : vector<8x128xf32>
    %56 = tpu.matmul %55, %54, %cst_28 {dimension_numbers = #tpu.dot_dimension_numbers<[1], [0], [0], [1], [0, 0, 1, 1], [], []>} : vector<8x128xbf16>, vector<128x128xbf16>, vector<8x128xf32> -> vector<8x128xf32>
    %c0_29 = arith.constant 0 : index
    %c0_30 = arith.constant 0 : index
    %57 = vector.load %arg8[%c0_29, %c0_30] : memref<1x128xf32, #tpu.memory_space<vmem>>, vector<1x128xf32>
    %58 = vector.broadcast %57 : vector<1x128xf32> to vector<8x128xf32>
    %59 = arith.addf %56, %58 : vector<8x128xf32>
    %c0_31 = arith.constant 0 : index
    %c0_32 = arith.constant 0 : index
    %60 = vector.load %arg9[%c0_31, %c0_32] : memref<8x128xf32, #tpu.memory_space<vmem>>, vector<8x128xf32>
    tpu.vector_store %arg9[%c0_31, %c0_32], %59 {strides = array<i32>} : memref<8x128xf32, #tpu.memory_space<vmem>>, vector<8x128xf32>,
    return
  }
}

</mosaic_0001>

<bundles_post_ra>
// kernel: tpu_custom_call.1
= control target key start
LH: loop header
LB: loop body
LE: loop exit
PB: predicated region body
PF: predicated region fallthrough
CT: control target
= control target key end

     0   :  { %14 = vsyncpa [#allocation3], 0  ;;  %s798_s0 = inlined_call_operand.hbm [shape: bf16[8,128], index: 0, kind: input, shape index: {}]   ;;  %s799_s1 = inlined_call_operand.hbm [shape: bf16[128,128], index: 1, kind: input, shape index: {}]   ;;  %s800_s2 = inlined_call_operand.vmem [shape: f32[1,128], index: 2, kind: input, shape index: {}]   ;;  %s801_s3 = inlined_call_operand.vmem [shape: f32[1,128], index: 3, kind: input, shape index: {}]   ;;  %s802_s4 = inlined_call_operand.hbm [shape: bf16[128,128], index: 4, kind: input, shape index: {}]   ;;  %s803_s5 = inlined_call_operand.vmem [shape: f32[1,128], index: 5, kind: input, shape index: {}]   ;;  %s804_s6 = inlined_call_operand.vmem [shape: f32[1,128], index: 6, kind: input, shape index: {}]   ;;  %s805_s7 = inlined_call_operand.hbm [shape: bf16[128,128], index: 7, kind: input, shape index: {}]   ;;  %s806_s8 = inlined_call_operand.vmem [shape: f32[1,128], index: 8, kind: input, shape index: {}]   ;;  %s807_s9 = inlined_call_operand.hbm [shape: f32[8,128], index: 9, kind: output, shape index: {}]  }
   0x1   :  { %15 = vsyncpa [#allocation6], 0 }
   0x2   :  { %16 = vsyncpa [#allocation9], 0  ;;  %s33_s11 = sshll.u32 %s799_s1, 4  ;;  %s34_s11 = int_to_ptr.hbm [resolvable:$true] %s33_s11 }
   0x3   :  { %17 = vsyncpa [#allocation4], 0  ;;  %s704_s12 = smov [#allocation5]   ;;  %s23_s16 = sshll.u32 %s798_s0, 4  ;;  %s24_s16 = int_to_ptr.hbm [resolvable:$true] %s23_s16 }
   0x4   :  { %s35_s13 = sshll.u32 %s704_s12, 4  ;;  %s705_s17 = smov 64   ;;  %s36_s13 = int_to_ptr.vmem [resolvable:$true] %s35_s13 }
   0x5   :  { %s706_s18 = smov 4   ;;  %s707_s19 = smov [#allocation2]  }
   0x6   :  { %41 = dma.hbm_to_vmem [thread:$0]  %s34_s11, 1024, %s36_s13, [#allocation6], %s705_s17, %s705_s17, %s706_s18  }
   0x7   :  { %s25_s20 = sshll.u32 %s707_s19, 4  ;;  %s50_s23 = sshll.u32 %s802_s4, 4  ;;  %s26_s20 = int_to_ptr.vmem [resolvable:$true] %s25_s20  ;;  %s51_s23 = int_to_ptr.hbm [resolvable:$true] %s50_s23 }
   0x8   :  { %28 = dma.hbm_to_vmem [thread:$0]  %s24_s16, 64, %s26_s20, [#allocation3]  }
   0x9   :  { %s67_s25 = sshll.u32 %s805_s7, 4  ;;  %s708_s26 = smov [#allocation7]   ;;  %s68_s25 = int_to_ptr.hbm [resolvable:$true] %s67_s25 }
   0xa   :  { %s52_s27 = sshll.u32 %s708_s26, 4  ;;  %s709_s0 = smov [#allocation8]   ;;  %s53_s27 = int_to_ptr.vmem [resolvable:$true] %s52_s27 }
   0xb   :  { %58 = dma.hbm_to_vmem [thread:$0]  %s51_s23, 1024, %s53_s27, [#allocation6], %s705_s17, %s705_s17, %s706_s18  }
   0xc   :  { %s69_s28 = sshll.u32 %s709_s0, 4  ;;  %s70_s28 = int_to_ptr.vmem [resolvable:$true] %s69_s28 }
   0xd   :  { %75 = dma.hbm_to_vmem [thread:$0]  %s68_s25, 1024, %s70_s28, [#allocation9], %s705_s17, %s705_s17, %s706_s18  }
   0xe   :  { %696 = dma.done.wait [#allocation3], 64  }
   0xf   :  { %697 = vsyncadd [#allocation3], 4294967232 }
  0x10   :  { %698 = dma.done.wait [#allocation6], 2048  }
  0x11   :  { %699 = vsyncadd [#allocation6], 4294965248 }
  0x12   :  { %700 = dma.done.wait [#allocation9], 1024  }
  0x13   :  { %701 = vsyncadd [#allocation9], 4294966272  ;;  %v542_v0 = vld [vmem:[#allocation5 + $0x38] sm:$0xff]  ;;  %v541_v1 = vld [vmem:[#allocation5 + $0x30] sm:$0xff]  ;;  %v710_v9 = vmov 8.0   ;;  %s427_s17 = sshll.u32 %s807_s9, 4  ;;  %s428_s17 = int_to_ptr.hbm [resolvable:$true] %s427_s17 }
  0x14   :  { %159 = vmatpush.bf16.msra.mxu0 %v542_v0  ;;  %v540_v2 = vld [vmem:[#allocation5 + $0x28] sm:$0xff]  ;;  %v539_v3 = vld [vmem:[#allocation5 + $0x20] sm:$0xff]  ;;  %v538_v4 = vld [vmem:[#allocation5 + $0x18] sm:$0xff]  ;;  %570 = vrcp.f32 %v710_v9 }
  0x15   :  { %v537_v5 = vld [vmem:[#allocation5 + $0x10] sm:$0xff]  ;;  %v536_v6 = vld [vmem:[#allocation5 + $0x8] sm:$0xff]  ;;  %v535_v7 = vld [vmem:[#allocation5] sm:$0xff] }
  0x16   :  { %v94_v8 = vld [vmem:[#allocation2] sm:$0xf]  ;;  %v549_v20 = vld [vmem:[#allocation7 + $0x30] sm:$0xff]  ;;  %v548_v25 = vld [vmem:[#allocation7 + $0x28] sm:$0xff] }
  0x17   :  { %v550_v16 = vld [vmem:[#allocation7 + $0x38] sm:$0xff]  ;;  %v547_v28 = vld [vmem:[#allocation7 + $0x20] sm:$0xff]  ;;  %v545_v34 = vld [vmem:[#allocation7 + $0x10] sm:$0xff] }
  0x18   :  { %160 = vmatpush.bf16.msra.mxu0 %v541_v1  ;;  %284 = vmatpush.bf16.msra.mxu1 %v550_v16  ;;  %v546_v31 = vld [vmem:[#allocation7 + $0x18] sm:$0xff]  ;;  %v544_v37 = vld [vmem:[#allocation7 + $0x8] sm:$0xff]  ;;  %v543_v39 = vld [vmem:[#allocation7] sm:$0xff] }
  0x19   :  { %v172_v48 = vld [vmem:[%s800_s2] sm:$0x1]  ;;  %v557_v0 = vld [vmem:[#allocation8 + $0x30] sm:$0xff]  ;;  %v552_v16 = vld [vmem:[#allocation8 + $0x8] sm:$0xff] }
  0x1a   :  { %v571_v10 = vpop.eup %570  ;;  %v567_v53 = vld [vmem:[%s801_s3] ss:$0 sm:$0xff] }
  0x1b   :  { %v181_v11 = vmul.f32 8.0, %v571_v10  ;;  %vm185_vm0 = vweird.f32 %v571_v10  ;;  %v558_v61 = vld [vmem:[#allocation8 + $0x38] sm:$0xff] }
  0x1c   :  { %161 = vmatpush.bf16.msra.mxu0 %v540_v2  ;;  %285 = vmatpush.bf16.msra.mxu1 %v549_v20 }
  0x1d   :  { %v182_v12 = vsub.f32 1.0, %v181_v11  ;;  %406 = vmatpush.bf16.msra.mxu2 %v558_v61 }
  0x1f   :  { %v183_v15 = vmul.f32 %v571_v10, %v182_v12 }
  0x20   :  { %162 = vmatpush.bf16.msra.mxu0 %v539_v3  ;;  %286 = vmatpush.bf16.msra.mxu1 %v548_v25 }
  0x21   :  { %v184_v19 = vadd.f32 %v571_v10, %v183_v15  ;;  %407 = vmatpush.bf16.msra.mxu2 %v557_v0 }
  0x23   :  { %v774_v24 = vsel %vm185_vm0, %v571_v10, %v184_v19  ;;  %v554_v10 = vld [vmem:[#allocation8 + $0x18] sm:$0xff] }
  0x24   :  { %163 = vmatpush.bf16.msra.mxu0 %v538_v4  ;;  %287 = vmatpush.bf16.msra.mxu1 %v547_v28  ;;  %v556_v4 = vld [vmem:[#allocation8 + $0x28] sm:$0xff]  ;;  %v297_v28 = vld [vmem:[%s803_s5] sm:$0x1]  ;;  %s711_s5 = smov [#allocation10]  }
  0x25   :  { %408 = vmatpush.bf16.msra.mxu2 %v556_v4  ;;  %s425_s14 = sshll.u32 %s711_s5, 4  ;;  %s426_s14 = int_to_ptr.vmem [resolvable:$true] %s425_s14 }
  0x28   :  { %164 = vmatpush.bf16.msra.mxu0 %v537_v5  ;;  %288 = vmatpush.bf16.msra.mxu1 %v546_v31 }
  0x2c   :  { %165 = vmatpush.bf16.msra.mxu0 %v536_v6  ;;  %289 = vmatpush.bf16.msra.mxu1 %v545_v34 }
  0x30   :  { %166 = vmatpush.bf16.msra.mxu0 %v535_v7  ;;  %290 = vmatpush.bf16.msra.mxu1 %v544_v37  ;;  %v555_v7 = vld [vmem:[#allocation8 + $0x20] sm:$0xff] }
  0x31   :  { %409 = vmatpush.bf16.msra.mxu2 %v555_v7 }
  0x33   :  { %167 = vmatmul.bf16.vlgmr.msra.gmra.mxu0 %v94_v8 }
  0x34   :  { %291 = vmatpush.bf16.msra.mxu1 %v543_v39 }
  0x35   :  { %410 = vmatpush.bf16.msra.mxu2 %v554_v10 }
  0xb0   :  { %v168_v13 = vpop.f32.mrf.mxu0 }
  0xb1   :  { %v174_v14 = vrot.slane %v168_v13, 4 }
  0xb3   :  { %v175_v17 = vadd.f32 %v174_v14, %v168_v13 }
  0xb5   :  { %v176_v18 = vrot.slane %v175_v17, 2 }
  0xb7   :  { %v177_v21 = vadd.f32 %v176_v18, %v175_v17  ;;  %v551_v18 = vld [vmem:[#allocation8] sm:$0xff] }
  0xb8   :  { %v170_v22 = vpop.f32.mrf.mxu0 }
  0xb9   :  { %v178_v23 = vrot.slane %v177_v21, 1 }
  0xbb   :  { %v179_v26 = vadd.f32 %v178_v23, %v177_v21 }
  0xbd   :  { %v187_v27 = vmul.f32 %v774_v24, %v179_v26 }
  0xbf   :  { %v188_v29 = vsub.f32 %v168_v13, %v187_v27  ;;  %v553_v13 = vld [vmem:[#allocation8 + $0x10] sm:$0xff] }
  0xc0   :  { %411 = vmatpush.bf16.msra.mxu2 %v553_v13 }
  0xc1   :  { %v189_v30 = vmul.f32 %v188_v29, %v188_v29 }
  0xc3   :  { %v190_v32 = vrot.slane %v189_v30, 4 }
  0xc4   :  { %412 = vmatpush.bf16.msra.mxu2 %v552_v16 }
  0xc5   :  { %v191_v33 = vadd.f32 %v190_v32, %v189_v30 }
  0xc7   :  { %v192_v35 = vrot.slane %v191_v33, 2 }
  0xc8   :  { %413 = vmatpush.bf16.msra.mxu2 %v551_v18 }
  0xc9   :  { %v193_v36 = vadd.f32 %v192_v35, %v191_v33 }
  0xcb   :  { %v194_v38 = vrot.slane %v193_v36, 1 }
  0xcd   :  { %v195_v40 = vadd.f32 %v194_v38, %v193_v36  ;;  %v569_v38 = vld [vmem:[%s806_s8] ss:$0 sm:$0xff] }
  0xcf   :  { %v196_v41 = vmul.f32 %v195_v40, %v774_v24 }
  0xd1   :  { %v197_v42 = vadd.f32 1e-05, %v196_v41 }
  0xd3   :  { %572 = vrsqrt.f32 %v197_v42  ;;  %vm204_vm2 = vweird.f32 %v197_v42 }
  0xd9   :  { %v573_v43 = vpop.eup %572 }
  0xda   :  { %v199_v44 = vmul.f32 %v573_v43, %v197_v42  ;;  %vm205_vm1 = vweird.f32 %v573_v43 }
  0xdb   :  { %vm206_vm3 = vmor %vm204_vm2, %vm205_vm1 }
  0xdc   :  { %v200_v45 = vmul.f32 %v573_v43, %v199_v44 }
  0xde   :  { %v201_v46 = vmul.f32 0.5, %v200_v45 }
  0xe0   :  { %v202_v47 = vsub.f32 1.5, %v201_v46 }
  0xe2   :  { %v203_v49 = vmul.f32 %v573_v43, %v202_v47 }
  0xe4   :  { %v207_v50 = vsel %vm206_vm3, %v573_v43, %v203_v49 }
  0xe5   :  { %v208_v51 = vmul.f32 %v207_v50, %v172_v48 }
  0xe7   :  { %v210_v52 = vperm.slane %v208_v51, 0 }
  0xe9   :  { %v212_v54 = vmul.f32 %v210_v52, %v188_v29 }
  0xeb   :  { %v216_v55 = vadd.f32 %v567_v53, %v212_v54 }
  0xed   :  { %v217_v56 = vmul.f32 0.2, %v216_v55 }
  0xef   :  { %v218_v57 = vmax.f32 %v216_v55, %v217_v56 }
  0xf1   :  { %v235_v58 = vpack.c.bf16 %v218_v57, %v218_v57 }
  0xf3   :  { %292 = vmatmul.bf16.vlgmr.msra.gmra.mxu1 %v235_v58 }
 0x170   :  { %v293_v59 = vpop.f32.mrf.mxu1 }
 0x171   :  { %v299_v60 = vrot.slane %v293_v59, 4 }
 0x173   :  { %v300_v62 = vadd.f32 %v299_v60, %v293_v59 }
 0x175   :  { %v301_v63 = vrot.slane %v300_v62, 2 }
 0x177   :  { %v302_v1 = vadd.f32 %v301_v63, %v300_v62 }
 0x178   :  { %v295_v2 = vpop.f32.mrf.mxu1 }
 0x179   :  { %v303_v3 = vrot.slane %v302_v1, 1 }
 0x17b   :  { %v304_v5 = vadd.f32 %v303_v3, %v302_v1 }
 0x17d   :  { %v305_v6 = vmul.f32 %v304_v5, %v774_v24 }
 0x17f   :  { %v306_v8 = vsub.f32 %v293_v59, %v305_v6 }
 0x181   :  { %v307_v9 = vmul.f32 %v306_v8, %v306_v8 }
 0x183   :  { %v308_v11 = vrot.slane %v307_v9, 4 }
 0x185   :  { %v309_v12 = vadd.f32 %v308_v11, %v307_v9 }
 0x187   :  { %v310_v14 = vrot.slane %v309_v12, 2 }
 0x189   :  { %v311_v15 = vadd.f32 %v310_v14, %v309_v12 }
 0x18b   :  { %v312_v17 = vrot.slane %v311_v15, 1 }
 0x18d   :  { %v313_v19 = vadd.f32 %v312_v17, %v311_v15 }
 0x18f   :  { %v314_v20 = vmul.f32 %v313_v19, %v774_v24  ;;  %v568_v24 = vld [vmem:[%s804_s6] ss:$0 sm:$0xff] }
 0x191   :  { %v315_v21 = vadd.f32 1e-05, %v314_v20 }
 0x193   :  { %574 = vrsqrt.f32 %v315_v21  ;;  %vm322_vm5 = vweird.f32 %v315_v21 }
 0x199   :  { %v575_v22 = vpop.eup %574 }
 0x19a   :  { %v317_v23 = vmul.f32 %v575_v22, %v315_v21  ;;  %vm323_vm4 = vweird.f32 %v575_v22 }
 0x19b   :  { %vm324_vm6 = vmor %vm322_vm5, %vm323_vm4 }
 0x19c   :  { %v318_v25 = vmul.f32 %v575_v22, %v317_v23 }
 0x19e   :  { %v319_v26 = vmul.f32 0.5, %v318_v25 }
 0x1a0   :  { %v320_v27 = vsub.f32 1.5, %v319_v26 }
 0x1a2   :  { %v321_v29 = vmul.f32 %v575_v22, %v320_v27 }
 0x1a4   :  { %v325_v30 = vsel %vm324_vm6, %v575_v22, %v321_v29 }
 0x1a5   :  { %v326_v31 = vmul.f32 %v325_v30, %v297_v28 }
 0x1a7   :  { %v328_v32 = vperm.slane %v326_v31, 0 }
 0x1a9   :  { %v330_v33 = vmul.f32 %v328_v32, %v306_v8 }
 0x1ab   :  { %v334_v34 = vadd.f32 %v568_v24, %v330_v33 }
 0x1ad   :  { %v335_v35 = vmul.f32 0.2, %v334_v34 }
 0x1af   :  { %v336_v36 = vmax.f32 %v334_v34, %v335_v35 }
 0x1b1   :  { %v353_v37 = vpack.c.bf16 %v336_v36, %v336_v36 }
 0x1b3   :  { %414 = vmatmul.bf16.vlgmr.msra.gmra.mxu2 %v353_v37 }
 0x236   :  { %v415_v39 = vpop.f32.mrf.mxu2 }
 0x237   :  { %v416_v40 = vadd.f32 %v569_v38, %v415_v39 }
 0x239   :  { %419 = vst [vmem:[#allocation10] sm:$0xff] %v416_v40 }
 0x23a   :  { %430 = dma.vmem_to_hbm [thread:$0]  %s426_s14, 128, %s428_s17, [#allocation4]  }
 0x23e   :  { %v417_v41 = vpop.f32.mrf.mxu2 }
 0x23f   :  { %702 = dma.done.wait [#allocation4], 128  }
 0x240   :  { %703 = vsyncadd [#allocation4], 4294967168 }
 0x241   :  { %435 = vsyncpa [#allocation3], 1 }
 0x242   :  { %436 = vsyncpa [#allocation6], 1 }
 0x243   :  { %437 = vsyncpa [#allocation9], 1 }
 0x244   :  { %438 = vsyncpa [#allocation4], 1 }

</bundles_post_ra>
